<compile_context>
chip_gen: v7x
topology: tpu7x:2x2x1
jax: 0.10.0
libtpu: 0.0.40
codegen_flags: <defaults>
</compile_context>

<pallas_src>
import functools

import jax
import jax.numpy as jnp
from jax import lax
from jax.experimental import pallas as pl
from jax.experimental.pallas import tpu as pltpu


# --------------------------------------------------------------------------- #
# Kernel
# --------------------------------------------------------------------------- #
def _amsoftmax_kernel(inv_x_ref, label_ref, x_ref, w_ref,
                      logits_ref, cos_ref, *, m, s, tn):
    # inv_x_ref : (tb, 1)  f32   precomputed 1 / max(||x_b||_2, 1e-12)
    # label_ref : (tb, 1)  i32
    # x_ref     : (tb, D)  f32/bf16  raw features (batch tile)
    # w_ref     : (D, tn)  f32/bf16  raw class-weight tile (pre-transposed layout)
    # logits_ref / cos_ref : (tb, tn) f32
    c = pl.program_id(0)                       # class-tile index (outer grid axis)

    x = x_ref[...]
    w = w_ref[...]

    # Canonical MXU matmul on un-normalized operands: (tb, D) @ (D, tn).
    raw = jnp.dot(x, w, preferred_element_type=jnp.float32)

    # Per-class inverse L2 norms.  With the (D, tn) layout this is a cheap
    # SUBLANE reduce (mostly VPU adds) that already lands in (1, tn) lane
    # layout -- no cross-lane XLU reduce, no relayout.  eps clamp on the
    # SQUARED norm keeps F.normalize(clamp_min(1e-12)) behavior for zero rows.
    w32 = w.astype(jnp.float32)
    w_sumsq = jnp.sum(w32 * w32, axis=0, keepdims=True)          # (1, tn)
    inv_w = lax.rsqrt(jnp.maximum(w_sumsq, jnp.float32(1e-24)))  # (1, tn), EUP

    cos = raw * inv_x_ref[...] * inv_w
    cos = jnp.clip(cos, -1.0 + 1e-07, 1.0 - 1e-07)

    # margin[b, c_glob] = m iff c_glob == label[b]   (scatter-free one-hot)
    tb = cos.shape[0]
    col = lax.broadcasted_iota(jnp.int32, (tb, tn), 1) + c * tn
    margin = jnp.where(col == label_ref[...], jnp.float32(m), jnp.float32(0.0))

    logits_ref[...] = jnp.float32(s) * (cos - margin)
    cos_ref[...] = cos


# --------------------------------------------------------------------------- #
# Sizing helpers (generation-aware)
# --------------------------------------------------------------------------- #
def _round_up(x, n):
    return (x + n - 1) // n * n


def _cdiv(a, b):
    return -(-a // b)


def _vmem_capacity_bytes():
    """Physical VMEM per TensorCore; conservative (v7x) fallback if unknown."""
    try:
        info = pltpu.get_tpu_info()
        cap = getattr(info, "vmem_capacity_bytes", None)
        if cap:
            return int(cap)
    except Exception:
        pass
    return 64 << 20


def _choose_tn(C, D, vmem_cap, itemsize=4):
    """256-aligned class tile.  Bigger tiles on 128 MiB chips (v5e/v6e),
    conservative slab + even tile-count bias on v7x (64 MiB, 2 TCs)."""
    two_tc_chip = vmem_cap < (96 << 20)                 # v7x heuristic
    weight_cap = (8 << 20) if two_tc_chip else (32 << 20)
    tn = 256
    while True:
        nt = tn * 2
        if _cdiv(C, nt) < 2:                            # keep >= 2 class tiles
            break
        if 2 * nt * D * itemsize > weight_cap:          # double-buffered slab
            break
        if _round_up(C, nt) - C > max(C // 8, nt // 8):  # cap padding waste
            break
        tn = nt
    # v7x: prefer an EVEN class-tile count so both TensorCores get equal work.
    if (two_tc_chip and tn > 256 and _cdiv(C, tn) % 2 == 1
            and _cdiv(C, tn // 2) % 2 == 0):
        tn //= 2
    return tn


def _vmem_limit_bytes(tb, D, tn, vmem_cap, w_itemsize, x_itemsize):
    need = (2 * D * tn * w_itemsize        # weight tile, double-buffered
            + 2 * 2 * tb * tn * 4          # two f32 outputs, double-buffered
            + 2 * tb * D * x_itemsize      # x tile, double-buffered
            + 4 * tb * 4)                  # inv_x + label
    if vmem_cap >= (96 << 20):             # v5e / v6e: 128 MiB physical VMEM
        return int(min(max(need + (8 << 20), 32 << 20), 96 << 20))
    else:                                  # v7x: 64 MiB per TC -> leave headroom
        return int(min(max(need + (4 << 20), 16 << 20), 40 << 20))


# --------------------------------------------------------------------------- #
# Wrapper
# --------------------------------------------------------------------------- #
def prepare_amsoftmax_weight(weight, *, use_bf16=False, tn=None):
    """One-time 'parameter creation' transform.

    weight: (C, D) PyTorch Parameter layout.
    Returns (weight_t, tn) where weight_t is (D, C_pad): transposed so the
    kernel runs a canonical MXU matmul with no per-tile transpose and the
    per-class norm is a sublane reduce, padded so C_pad % tn == 0.
    Padded columns are all-zero and can never match a label (< C).
    """
    C, D = weight.shape
    dtype = jnp.bfloat16 if use_bf16 else jnp.float32
    if tn is None:
        tn = _choose_tn(C, D, _vmem_capacity_bytes(), jnp.dtype(dtype).itemsize)
    C_pad = _round_up(C, tn)
    wt = weight.astype(dtype).T                                  # (D, C)
    if C_pad != C:
        wt = jnp.pad(wt, ((0, 0), (0, C_pad - C)))
    return wt, tn


def amsoftmax_forward(x, weight_t, label, *, n_class, tn, m=0.25, s=30.0):
    """Pallas AMSoftmaxLayer.forward.

    x: (B, D) float, weight_t: (D, C_pad) from prepare_amsoftmax_weight,
    label: (B,) int.  Returns (amsoftmax_logits, cos_theta), both (B, n_class) f32.
    """
    B, D = x.shape
    D2, C_pad = weight_t.shape
    assert D == D2 and C_pad % tn == 0 and C_pad >= n_class

    # Row inverse-norms of x, computed ONCE in f32 (F.normalize eps=1e-12).
    xf = x.astype(jnp.float32)
    inv_x = lax.rsqrt(jnp.maximum(jnp.sum(xf * xf, axis=1, keepdims=True),
                                  jnp.float32(1e-24)))           # (B, 1)
    label2d = label.astype(jnp.int32).reshape(B, 1)

    # Stream x in the same dtype as the weight (bf16 when enabled).
    x_stream = xf.astype(weight_t.dtype)

    # Batch padding / tiling: multiple of 8 (f32 sublane), <= 256 rows per tile.
    if B <= 256:
        B_pad = _round_up(B, 8)
        tb = B_pad
    else:
        tb = 256
        B_pad = _round_up(B, tb)
    if B_pad != B:
        pad = B_pad - B
        x_stream = jnp.pad(x_stream, ((0, pad), (0, 0)))
        inv_x = jnp.pad(inv_x, ((0, pad), (0, 0)))
        label2d = jnp.pad(label2d, ((0, pad), (0, 0)), constant_values=-1)

    nc = C_pad // tn
    nb = B_pad // tb
    vmem_cap = _vmem_capacity_bytes()
    vmem_limit = _vmem_limit_bytes(tb, D, tn, vmem_cap,
                                   weight_t.dtype.itemsize,
                                   x_stream.dtype.itemsize)

    kernel = functools.partial(_amsoftmax_kernel, m=float(m), s=float(s), tn=tn)

    out_shapes = (
        jax.ShapeDtypeStruct((B_pad, C_pad), jnp.float32),
        jax.ShapeDtypeStruct((B_pad, C_pad), jnp.float32),
    )

    # Class axis OUTER: weight block index is constant across inner batch steps
    # -> the dominant weight stream is DMA'd from HBM exactly once.
    grid_spec = pltpu.PrefetchScalarGridSpec(
        num_scalar_prefetch=0,
        grid=(nc, nb),
        in_specs=[
            pl.BlockSpec((tb, 1), lambda c, b: (b, 0)),    # inv_x
            pl.BlockSpec((tb, 1), lambda c, b: (b, 0)),    # label
            pl.BlockSpec((tb, D), lambda c, b: (b, 0)),    # x batch tile
            pl.BlockSpec((D, tn), lambda c, b: (0, c)),    # weight tile (D, tn)
        ],
        out_specs=[
            pl.BlockSpec((tb, tn), lambda c, b: (b, c)),
            pl.BlockSpec((tb, tn), lambda c, b: (b, c)),
        ],
    )

    cost = pl.CostEstimate(
        flops=int(2 * B_pad * C_pad * D + nb * 3 * C_pad * D),
        transcendentals=int(B + nb * C_pad),
        bytes_accessed=int(C_pad * D * weight_t.dtype.itemsize
                           + nc * B_pad * D * x_stream.dtype.itemsize
                           + 2 * B_pad * C_pad * 4
                           + 8 * B_pad),
    )

    logits, cos = pl.pallas_call(
        kernel,
        out_shape=out_shapes,
        grid_spec=grid_spec,
        compiler_params=pltpu.CompilerParams(
            dimension_semantics=("parallel", "parallel"),
            vmem_limit_bytes=vmem_limit,
        ),
        cost_estimate=cost,
    )(inv_x, label2d, x_stream, weight_t)

    if B_pad != B or C_pad != n_class:
        logits = logits[:B, :n_class]
        cos = cos[:B, :n_class]
    return logits, cos


# --------------------------------------------------------------------------- #
# Pure-JAX reference (mirrors the PyTorch forward exactly)
# --------------------------------------------------------------------------- #
def _reference(x, weight, label, m=0.25, s=30.0):
    eps = 1e-12
    xn = x / jnp.maximum(jnp.linalg.norm(x, axis=1, keepdims=True), eps)
    wn = weight / jnp.maximum(jnp.linalg.norm(weight, axis=1, keepdims=True), eps)
    cos = jnp.clip(xn @ wn.T, -1.0 + 1e-07, 1.0 - 1e-07)
    margin = jax.nn.one_hot(label, weight.shape[0], dtype=cos.dtype) * m
    return s * (cos - margin), cos


if __name__ == "__main__":
    # Small shapes consistent with the module (in_nodes features, n_class classes).
    B = 8
    in_nodes = 128
    n_class = 512          # -> 2 class tiles of 256 (exercises grid / megacore path)
    m, s = 0.25, 30.0

    key = jax.random.PRNGKey(0)
    kx, kw, kl = jax.random.split(key, 3)

    x = jax.random.normal(kx, (B, in_nodes), dtype=jnp.float32)

    # Deterministic xavier_normal_ init: std = gain * sqrt(2 / (fan_in + fan_out))
    xavier_std = (2.0 / (n_class + in_nodes)) ** 0.5
    weight = jax.random.normal(kw, (n_class, in_nodes), dtype=jnp.float32) * xavier_std

    label = jax.random.randint(kl, (B,), 0, n_class, dtype=jnp.int32)

    # One-time parameter-layout transform (done at "parameter creation", not per call).
    weight_t, tn = prepare_amsoftmax_weight(weight)   # use_bf16=True halves HBM traffic
                                                      # but loosens cos accuracy to ~1e-3.

    logits, cos_theta = amsoftmax_forward(x, weight_t, label,
                                          n_class=n_class, tn=tn, m=m, s=s)
    jax.block_until_ready((logits, cos_theta))

    ref_logits, ref_cos = _reference(x, weight, label, m=m, s=s)
    assert jnp.allclose(logits, ref_logits, atol=1e-4, rtol=1e-4)
    assert jnp.allclose(cos_theta, ref_cos, atol=1e-5, rtol=1e-5)

    print("KERNEL_OK")
</pallas_src>

<mosaic_0001>
module attributes {stable_mosaic.version = 11 : i64} {
  func.func @_amsoftmax_kernel(%arg0: i32, %arg1: i32, %arg2: memref<8x1xf32, #tpu.memory_space<vmem>>, %arg3: memref<8x1xi32, #tpu.memory_space<vmem>>, %arg4: memref<8x128xf32, #tpu.memory_space<vmem>>, %arg5: memref<128x256xf32, #tpu.memory_space<vmem>>, %arg6: memref<8x256xf32, #tpu.memory_space<vmem>>, %arg7: memref<8x256xf32, #tpu.memory_space<vmem>>) attributes {dimension_semantics = [#tpu.dimension_semantics<parallel>, #tpu.dimension_semantics<parallel>], iteration_bounds = array<i64: 2, 1>, scalar_prefetch = 0 : i64, scratch_operands = 0 : i64, tpu.core_type = #tpu.core_type<tc>, window_params = [{transform_indices = @transform_0, window_bounds = array<i64: 8, 1>}, {transform_indices = @transform_1, window_bounds = array<i64: 8, 1>}, {transform_indices = @transform_2, window_bounds = array<i64: 8, 128>}, {transform_indices = @transform_3, window_bounds = array<i64: 128, 256>}, {transform_indices = @transform_4, window_bounds = array<i64: 8, 256>}, {transform_indices = @transform_5, window_bounds = array<i64: 8, 256>}]} {
    %c0 = arith.constant 0 : index
    %c0_0 = arith.constant 0 : index
    %0 = vector.load %arg4[%c0, %c0_0] : memref<8x128xf32, #tpu.memory_space<vmem>>, vector<8x128xf32>
    %c0_1 = arith.constant 0 : index
    %c0_2 = arith.constant 0 : index
    %1 = vector.load %arg5[%c0_1, %c0_2] : memref<128x256xf32, #tpu.memory_space<vmem>>, vector<128x256xf32>
    %cst = arith.constant dense<0.000000e+00> : vector<8x256xf32>
    %2 = tpu.matmul %0, %1, %cst {dimension_numbers = #tpu.dot_dimension_numbers<[1], [0], [0], [1], [0, 0, 1, 1], [], []>} : vector<8x128xf32>, vector<128x256xf32>, vector<8x256xf32> -> vector<8x256xf32>
    %3 = arith.mulf %1, %1 : vector<128x256xf32>
    %cst_3 = arith.constant dense<0.000000e+00> : vector<256xf32>
    %4 = vector.multi_reduction <add>, %3, %cst_3 [0] : vector<128x256xf32> to vector<256xf32>
    %5 = vector.shape_cast %4 : vector<256xf32> to vector<1x256xf32>
    %cst_4 = arith.constant 1.000000e-24 : f32
    %6 = vector.broadcast %cst_4 : f32 to vector<1x256xf32>
    %7 = arith.maximumf %5, %6 : vector<1x256xf32>
    %8 = math.rsqrt %7 : vector<1x256xf32>
    %c0_5 = arith.constant 0 : index
    %c0_6 = arith.constant 0 : index
    %9 = vector.load %arg2[%c0_5, %c0_6] : memref<8x1xf32, #tpu.memory_space<vmem>>, vector<8x1xf32>
    %10 = vector.broadcast %9 : vector<8x1xf32> to vector<8x256xf32>
    %11 = arith.mulf %2, %10 : vector<8x256xf32>
    %12 = vector.broadcast %8 : vector<1x256xf32> to vector<8x256xf32>
    %13 = arith.mulf %11, %12 : vector<8x256xf32>
    %cst_7 = arith.constant -0.99999988 : f32
    %cst_8 = arith.constant 0.99999988 : f32
    %14 = vector.broadcast %cst_7 : f32 to vector<8x256xf32>
    %15 = arith.maximumf %14, %13 : vector<8x256xf32>
    %16 = vector.broadcast %cst_8 : f32 to vector<8x256xf32>
    %17 = arith.minimumf %16, %15 : vector<8x256xf32>
    %18 = tpu.iota {dimensions = array<i32: 1>} : vector<8x256xi32>
    %c256_i32 = arith.constant 256 : i32
    %19 = arith.muli %arg0, %c256_i32 : i32
    %20 = vector.broadcast %19 : i32 to vector<8x256xi32>
    %21 = arith.addi %18, %20 : vector<8x256xi32>
    %c0_9 = arith.constant 0 : index
    %c0_10 = arith.constant 0 : index
    %22 = vector.load %arg3[%c0_9, %c0_10] : memref<8x1xi32, #tpu.memory_space<vmem>>, vector<8x1xi32>
    %23 = vector.broadcast %22 : vector<8x1xi32> to vector<8x256xi32>
    %24 = arith.cmpi eq, %21, %23 : vector<8x256xi32>
    %cst_11 = arith.constant 2.500000e-01 : f32
    %cst_12 = arith.constant 0.000000e+00 : f32
    %25 = vector.broadcast %cst_11 : f32 to vector<8x256xf32>
    %26 = vector.broadcast %cst_12 : f32 to vector<8x256xf32>
    %27 = arith.select %24, %25, %26 : vector<8x256xi1>, vector<8x256xf32>
    %28 = arith.subf %17, %27 : vector<8x256xf32>
    %cst_13 = arith.constant 3.000000e+01 : f32
    %29 = vector.broadcast %cst_13 : f32 to vector<8x256xf32>
    %30 = arith.mulf %29, %28 : vector<8x256xf32>
    %c0_14 = arith.constant 0 : index
    %c0_15 = arith.constant 0 : index
    %31 = vector.load %arg6[%c0_14, %c0_15] : memref<8x256xf32, #tpu.memory_space<vmem>>, vector<8x256xf32>
    tpu.vector_store %arg6[%c0_14, %c0_15], %30 {strides = array<i32>} : memref<8x256xf32, #tpu.memory_space<vmem>>, vector<8x256xf32>,
    %c0_16 = arith.constant 0 : index
    %c0_17 = arith.constant 0 : index
    %32 = vector.load %arg7[%c0_16, %c0_17] : memref<8x256xf32, #tpu.memory_space<vmem>>, vector<8x256xf32>
    tpu.vector_store %arg7[%c0_16, %c0_17], %17 {strides = array<i32>} : memref<8x256xf32, #tpu.memory_space<vmem>>, vector<8x256xf32>,
    return
  }
  func.func @transform_0(%arg0: i32, %arg1: i32) -> (i32, i32) {
    %c0_i32 = arith.constant 0 : i32
    %c0_i32_0 = arith.constant 0 : i32
    return %arg1, %c0_i32 : i32, i32
  }
  func.func @transform_1(%arg0: i32, %arg1: i32) -> (i32, i32) {
    %c0_i32 = arith.constant 0 : i32
    %c0_i32_0 = arith.constant 0 : i32
    return %arg1, %c0_i32 : i32, i32
  }
  func.func @transform_2(%arg0: i32, %arg1: i32) -> (i32, i32) {
    %c0_i32 = arith.constant 0 : i32
    %c0_i32_0 = arith.constant 0 : i32
    return %arg1, %c0_i32 : i32, i32
  }
  func.func @transform_3(%arg0: i32, %arg1: i32) -> (i32, i32) {
    %c0_i32 = arith.constant 0 : i32
    %c0_i32_0 = arith.constant 0 : i32
    return %c0_i32, %arg0 : i32, i32
  }
  func.func @transform_4(%arg0: i32, %arg1: i32) -> (i32, i32) {
    %c0_i32 = arith.constant 0 : i32
    return %arg1, %arg0 : i32, i32
  }
  func.func @transform_5(%arg0: i32, %arg1: i32) -> (i32, i32) {
    %c0_i32 = arith.constant 0 : i32
    return %arg1, %arg0 : i32, i32
  }
}

</mosaic_0001>

<bundles_post_ra>
// kernel: tpu_custom_call.1
= control target key start
LH: loop header
LB: loop body
LE: loop exit
PB: predicated region body
PF: predicated region fallthrough
CT: control target
= control target key end

     0   :  { %11 = vsyncpa [#allocation3], 0  ;;  %s1322_s0 = inlined_call_operand.vmem [shape: f32[8,1], index: 0, kind: input, shape index: {}]   ;;  %s1323_s1 = inlined_call_operand.vmem [shape: s32[8,1], index: 1, kind: input, shape index: {}]   ;;  %s1324_s2 = inlined_call_operand.vmem [shape: f32[8,128], index: 2, kind: input, shape index: {}]   ;;  %s1325_s3 = inlined_call_operand.hbm [shape: f32[128,512], index: 3, kind: input, shape index: {}]   ;;  %s1326_s4 = inlined_call_operand.hbm [shape: f32[8,512], index: 4, kind: output, shape index: {0}]   ;;  %s1327_s5 = inlined_call_operand.hbm [shape: f32[8,512], index: 5, kind: output, shape index: {1}]  }
   0x1   :  { %13 = vsyncpa [#allocation3 + $0x1], 0 }
   0x2   :  { %14 = vsyncpa [#allocation4], 0 }
   0x3   :  { %16 = vsyncpa [#allocation4 + $0x1], 0 }
   0x4   :  { %17 = vsyncpa [#allocation7], 0 }
   0x5   :  { %19 = vsyncpa [#allocation7 + $0x1], 0  ;;  %s1063_s18 = smov 0   ;;  %s1065_s19 = smov 0  }
   0x6   :  { %s1067_s20 = smov 0   ;;  %s1069_s21 = smov 0  }
   0x7   :  { %s1071_s22 = smov 0   ;;  %s1073_s23 = smov 0  }
   0x8 LB: > { %s742_s24 = sadd.s32 4294967295, %s1023_s23   ;;  %s743_s25 = sadd.s32 4294967294, %s1023_s23   ;;  %s1023_s23 = sphi %s1073_s23, %s25_s23   ;;  %s1019_s22 = sphi %s1071_s22, %s1341_s22   ;;  %s1015_s21 = sphi %s1069_s21, %s1340_s21   ;;  %s1011_s20 = sphi %s1067_s20, %s1339_s20   ;;  %s1007_s19 = sphi %s1065_s19, %s1338_s19   ;;  %s1003_s18 = sphi %s1063_s18, %s1337_s18  }
   0x9   : > { %s37_s26 = sadd.s32 1, %s1019_s22  ;;  %s122_s27 = sadd.s32 1, %s1011_s20 }
   0xa   : > { %p39_p0 = scmp.ge.s32.totalorder %s37_s26, 2  ;;  %p129_p1 = scmp.ne.s32.totalorder %s1011_s20, %s1007_s19 }
   0xb   : > { %p130_p2 = scmp.eq.s32.totalorder %s1023_s23, 0  ;;  %p135_p3 = scmp.ne.s32.totalorder %s1007_s19, %s1003_s18 }
   0xc   : > { %s1343_s26 = smov (%p39_p0, %s37_s26), 0  ;;  %p136_p5 = scmp.eq.s32.totalorder %s742_s24, 0 }
   0xd   : > { %p1104_p4 = por %p130_p2, %p129_p1  ;;  %s119_s29 = ssub.s32 %s1019_s22, %s1343_s26 }
   0xe   : > { %p161_p6 = scmp.eq.s32.totalorder %s742_s24, 1  ;;  %p120_p7 = scmp.eq.s32.totalorder %s119_s29, 0 }
   0xf   : > { %p1110_p8 = por %p136_p5, %p135_p3  ;;  %p167_p10 = scmp.eq.s32.totalorder %s743_s25, 1 }
  0x10   : > { %p1114_p9 = por %p161_p6, %p129_p1  ;;  %p819_p13 = scmp.lt.s32.totalorder %s1023_s23, 2 }
  0x11   : > { %s1119_s7 = scalar_select %p120_p7, %s1011_s20, %s122_s27  }
  0x12   : > { %s1331_s6 = scalar_select %p1114_p9, 1, 0 }
  0x13   : > { %p1121_p11 = por %p167_p10, %p135_p3  ;;  %s236_s9 = sand.u32 1, %s1011_s20  }
  0x14   : > { %s749_s10 = sshll.u32 %s236_s9, 8  ;;  %s767_s11 = sshll.u32 %s1019_s22, 8 }
  0x15   : > { %s1332_s8 = scalar_select %p1121_p11, 1, 0 }
  0x16   : > { %s1132_s14 = scalar_lea.hbm %s1325_s3, %s767_s11  ;;  %s240_s15 = scalar_lea.vmem [#allocation2], %s749_s10 }
  0x17   : > { %s247_s16 = sshll.u32 %s240_s15, 4  ;;  %p1138_p0 = pnand %p819_p13, %p1104_p4  ;;  %s1134_s16 = int_to_ptr.vmem [resolvable:$true] %s247_s16 }
  0x18   : > { %s1142_s24 = scalar_lea.sflag [#allocation3], %s236_s9  ;;  %s879_s25 = scalar_lea.hbm %s1132_s14, 4096 }
  0x19   : > { %p880_p1 = scmp.ne.s32.totalorder %s1132_s14, %s879_s25  ;;  %p881_p2 = pneg %p1138_p0 }
  0x1a   : > { %s884_s28 = scalar_lea.hbm %s1325_s3, 8192  ;;  %p885_p4 = scmp.lt.u32.totalorder %s1132_s14, %s1325_s3 }
  0x1b   : > { %p882_p3 = pnand %p881_p2, %p880_p1  ;;  %p886_p6 = scmp.lt.u32.totalorder %s884_s28, %s879_s25 }
  0x1c   : > { %p888_p10 = scmp.lt.u32.totalorder %s879_s25, %s1132_s14 }
  0x1d   : > { %p883_p5 = pneg %p882_p3  ;;  %p887_p7 = por %p886_p6, %p885_p4 }
  0x1f   : > { %p889_p13 = por %p888_p10, %p887_p7 }
  0x21   : > { %p890_p12 = pnand %p889_p13, %p883_p5 }
  0x23   : > { %893 = shalt.err (!%p890_p12)
}
  0x24   : > { %s894_s9 = scalar_lea.vmem %s1134_s16, 4096  ;;  %s1025_s12 = smov [#allocation2]  }
  0x25   : > { %p895_p1 = scmp.ne.s32.totalorder %s1134_s16, %s894_s9  ;;  %s899_s13 = sshll.u32 %s1025_s12, 4  ;;  %s900_s13 = int_to_ptr.vmem [resolvable:$false] %s899_s13 }
  0x26   : > { %s901_s15 = scalar_lea.vmem %s900_s13, 8192  ;;  %p902_p9 = scmp.lt.s32.totalorder %s1134_s16, %s900_s13 }
  0x27   : > { %p897_p3 = pnand %p895_p1, %p881_p2  ;;  %p903_p4 = scmp.lt.s32.totalorder %s901_s15, %s894_s9 }
  0x29   : > { %p898_p11 = pneg %p897_p3  ;;  %p904_p6 = por %p903_p4, %p902_p9 }
  0x2b   : > { %p905_p7 = pnand %p904_p6, %p898_p11 }
  0x2d   : > { %908 = shalt.err (!%p905_p7)
}
  0x2e   : > { %s1026_s25 = smov 512   ;;  %s1027_s27 = smov 256  }
  0x2f   : > { %s1028_s29 = smov 16   ;;  %p752_p12 = scmp.ge.s32.totalorder %s1023_s23, 1 }
  0x30   : > { %811 = dma.hbm_to_vmem [thread:$0]  (!%p1138_p0), %s1132_s14, 4096, %s1134_s16, %s1142_s24, %s1026_s25, %s1027_s27, %s1028_s29  }
  0x31   : > { %p255_p2 = scmp.lt.s32.totalorder %s1023_s23, 3 }
  0x33   : > { %p256_p5 = pnand %p752_p12, %p255_p2 }
  0x34   : > { %s1173_s28 = sand.u32 (!%p256_p5), 1, %s1007_s19  }
  0x35   : > { %259 = sbr.rel (%p256_p5) target bundleno = 353 (0x161), region = 36  ;;  %s753_s10 = sshll.u32 (!%p256_p5), %s1173_s28, 8 }
  0x36   : > { %s262_s11 = scalar_lea.sflag (!%p256_p5), [#allocation3], %s1173_s28  ;;  %s1177_s9 = scalar_lea.vmem (!%p256_p5), [#allocation2], %s753_s10 }
  0x3c   : > { %990 = dma.done.wait (%p1110_p8), %s262_s11, 4096  }
  0x3d   : > { %992 = vsyncadd (%p1110_p8), %s262_s11, 4294963200  ;;  %v1029_v0 = vmov 0.0   ;;  %v1030_v1 = vmov 0   ;;  %v326_v2 = vld [vmem:[%s1177_s9 + $0x8] sm:$0xff]  ;;  %v328_v3 = vld [vmem:[%s1177_s9 + $0x18] sm:$0xff]  ;;  %s1226_s13 = sshll.u32 %s1015_s21, 8 }
  0x3e   : > { %421 = vmatprep.mubr.f32.mxu0 %v1029_v0  ;;  %874 = vset.pattern.permute.xlu0 %v1030_v1  ;;  %v325_v4 = vld [vmem:[%s1177_s9] sm:$0xff]  ;;  %v770_v5 = vpack.c.bf16 %v328_v3, %v326_v2  ;;  %v429_v6 = vmul.f32 %v326_v2, %v326_v2  ;;  %v431_v7 = vmul.f32 %v328_v3, %v328_v3  ;;  %v327_v8 = vld [vmem:[%s1177_s9 + $0x10] sm:$0xff]  ;;  %v330_v10 = vld [vmem:[%s1177_s9 + $0x28] sm:$0xff]  ;;  %s754_s15 = sshll.u32 %s1173_s28, 4  ;;  %s1234_s10 = scalar_lea.hbm %s1327_s5, %s1226_s13 }
  0x3f   : > { %v428_v9 = vmul.f32 %v325_v4, %v325_v4  ;;  %v332_v11 = vld [vmem:[%s1177_s9 + $0x38] sm:$0xff]  ;;  %v772_v12 = vpack.c.bf16 %v327_v8, %v325_v4  ;;  %v430_v13 = vmul.f32 %v327_v8, %v327_v8  ;;  %v433_v15 = vmul.f32 %v330_v10, %v330_v10  ;;  %v329_v16 = vld [vmem:[%s1177_s9 + $0x20] sm:$0xff]  ;;  %v331_v17 = vld [vmem:[%s1177_s9 + $0x30] sm:$0xff]  ;;  %s308_s21 = scalar_lea.vmem [#allocation6], %s754_s15  ;;  %s1240_s11 = scalar_lea.vmem [#allocation5], %s754_s15 }
  0x40   : > { %v774_v14 = vpack.c.bf16 %v332_v11, %v330_v10  ;;  %v334_v18 = vld [vmem:[%s1177_s9 + $0x48] sm:$0xff]  ;;  %771 = vmatprep.subr.bf16.mxu0 %v770_v5  ;;  %v481_v19 = vadd.f32 %v431_v7, %v429_v6  ;;  %v435_v20 = vmul.f32 %v332_v11, %v332_v11  ;;  %v432_v21 = vmul.f32 %v329_v16, %v329_v16  ;;  %v336_v22 = vld [vmem:[%s1177_s9 + $0x58] sm:$0xff]  ;;  %v333_v29 = vld [vmem:[%s1177_s9 + $0x40] sm:$0xff]  ;;  %s581_s25 = sshll.u32 %s308_s21, 4  ;;  %s1247_s16 = scalar_lea.hbm %s1326_s4, %s1226_s13  ;;  %s1237_s25 = int_to_ptr.vmem [resolvable:$true] %s581_s25 }
  0x41   : > { %773 = vmatpush1.bf16.msra.mxu0 %v772_v12  ;;  %v460_v23 = vadd.f32 %v430_v13, %v428_v9  ;;  %v776_v24 = vpack.c.bf16 %v331_v17, %v329_v16  ;;  %v434_v25 = vmul.f32 %v331_v17, %v331_v17  ;;  %v778_v27 = vpack.c.bf16 %v336_v22, %v334_v18  ;;  %v335_v30 = vld [vmem:[%s1177_s9 + $0x50] sm:$0xff]  ;;  %v338_v33 = vld [vmem:[%s1177_s9 + $0x68] sm:$0xff]  ;;  %v340_v34 = vld [vmem:[%s1177_s9 + $0x78] sm:$0xff]  ;;  %s549_s17 = scalar_lea.sflag [#allocation7], %s1173_s28  ;;  %s909_s24 = scalar_lea.vmem %s1237_s25, 256 }
  0x42   : > { %775 = vmatprep.subr.bf16.mxu0 %v774_v14  ;;  %v482_v26 = vadd.f32 %v481_v19, %v433_v15  ;;  %v437_v28 = vmul.f32 %v334_v18, %v334_v18  ;;  %v436_v32 = vmul.f32 %v333_v29, %v333_v29  ;;  %v439_v36 = vmul.f32 %v336_v22, %v336_v22  ;;  %v337_v43 = vld [vmem:[%s1177_s9 + $0x60] sm:$0xff]  ;;  %v339_v44 = vld [vmem:[%s1177_s9 + $0x70] sm:$0xff]  ;;  %v342_v47 = vld [vmem:[%s1177_s9 + $0x88] sm:$0xff]  ;;  %p910_p8 = scmp.ne.s32.totalorder %s1237_s25, %s909_s24  ;;  %p1334_p9 = scmp.ne.s32.totalorder %s1331_s6, 0 }
  0x43   : > { %v461_v31 = vadd.f32 %v460_v23, %v432_v21  ;;  %v780_v38 = vpack.c.bf16 %v335_v30, %v333_v29  ;;  %v438_v39 = vmul.f32 %v335_v30, %v335_v30  ;;  %v782_v41 = vpack.c.bf16 %v340_v34, %v338_v33  ;;  %v344_v48 = vld [vmem:[%s1177_s9 + $0x98] sm:$0xff]  ;;  %v506_v51 = vld [vmem:[%s1322_s0] sm:$0xff]  ;;  %v341_v58 = vld [vmem:[%s1177_s9 + $0x80] sm:$0xff]  ;;  %s1031_s12 = smov [#allocation6]  }
  0x44   : > { %v483_v35 = vadd.f32 %v482_v26, %v435_v20  ;;  %v441_v42 = vmul.f32 %v338_v33, %v338_v33  ;;  %v440_v46 = vmul.f32 %v337_v43, %v337_v43  ;;  %v443_v50 = vmul.f32 %v340_v34, %v340_v34  ;;  %v343_v59 = vld [vmem:[%s1177_s9 + $0x90] sm:$0xff]  ;;  %v346_v62 = vld [vmem:[%s1177_s9 + $0xa8] sm:$0xff]  ;;  %v348_v63 = vld [vmem:[%s1177_s9 + $0xb8] sm:$0xff]  ;;  %509 = vperm.xlu0 %874, %v506_v51   ;;  %p911_p11 = pnand %p910_p8, %p1334_p9  ;;  %s913_s27 = sshll.u32 %s1031_s12, 4  ;;  %s914_s27 = int_to_ptr.vmem [resolvable:$false] %s913_s27 }
  0x45   : > { %777 = vmatpush1.bf16.msra.mxu0 %v776_v24  ;;  %v462_v37 = vadd.f32 %v461_v31, %v434_v25  ;;  %v784_v53 = vpack.c.bf16 %v339_v44, %v337_v43  ;;  %v442_v54 = vmul.f32 %v339_v44, %v339_v44  ;;  %v786_v56 = vpack.c.bf16 %v344_v48, %v342_v47  ;;  %v527_v3 = vld [vmem:[%s1323_s1] sm:$0xff]  ;;  %v345_v10 = vld [vmem:[%s1177_s9 + $0xa0] sm:$0xff]  ;;  %v350_v14 = vld [vmem:[%s1177_s9 + $0xc8] sm:$0xff]  ;;  %s915_s15 = scalar_lea.vmem %s914_s27, 512  ;;  %p916_p10 = scmp.lt.s32.totalorder %s1237_s25, %s914_s27 }
  0x46   : > { %779 = vmatprep.subr.bf16.mxu0 %v778_v27  ;;  %v484_v40 = vadd.f32 %v483_v35, %v437_v28  ;;  %v445_v57 = vmul.f32 %v342_v47, %v342_v47  ;;  %v444_v61 = vmul.f32 %v341_v58, %v341_v58  ;;  %v447_v2 = vmul.f32 %v344_v48, %v344_v48  ;;  %v347_v11 = vld [vmem:[%s1177_s9 + $0xb0] sm:$0xff]  ;;  %v352_v15 = vld [vmem:[%s1177_s9 + $0xd8] sm:$0xff]  ;;  %v349_v24 = vld [vmem:[%s1177_s9 + $0xc0] sm:$0xff]  ;;  %p912_p0 = pneg %p911_p11  ;;  %p917_p13 = scmp.lt.s32.totalorder %s915_s15, %s909_s24 }
  0x47   : > { %v463_v45 = vadd.f32 %v462_v37, %v436_v32  ;;  %v788_v5 = vpack.c.bf16 %v343_v59, %v341_v58  ;;  %v446_v6 = vmul.f32 %v343_v59, %v343_v59  ;;  %v790_v8 = vpack.c.bf16 %v348_v63, %v346_v62  ;;  %v351_v25 = vld [vmem:[%s1177_s9 + $0xd0] sm:$0xff]  ;;  %v354_v28 = vld [vmem:[%s1177_s9 + $0xe8] sm:$0xff]  ;;  %v356_v29 = vld [vmem:[%s1177_s9 + $0xf8] sm:$0xff] }
  0x48   : > { %v485_v49 = vadd.f32 %v484_v40, %v439_v36  ;;  %v449_v9 = vmul.f32 %v346_v62, %v346_v62  ;;  %v448_v13 = vmul.f32 %v345_v10, %v345_v10  ;;  %529 = vperm.xlu0 %874, %v527_v3   ;;  %v451_v17 = vmul.f32 %v348_v63, %v348_v63  ;;  %v324_v51 = vld [vmem:[%s1324_s2] sm:$0xff]  ;;  %p918_p1 = por %p917_p13, %p916_p10 }
  0x49   : > { %781 = vmatpush1.bf16.msra.mxu0 %v780_v38  ;;  %v464_v52 = vadd.f32 %v463_v45, %v438_v39  ;;  %v792_v19 = vpack.c.bf16 %v347_v11, %v345_v10  ;;  %v450_v20 = vmul.f32 %v347_v11, %v347_v11  ;;  %v794_v22 = vpack.c.bf16 %v352_v15, %v350_v14  ;;  %v353_v38 = vld [vmem:[%s1177_s9 + $0xe0] sm:$0xff]  ;;  %v355_v39 = vld [vmem:[%s1177_s9 + $0xf0] sm:$0xff]  ;;  %s565_s9 = sshll.u32 %s1240_s11, 4  ;;  %s1273_s9 = int_to_ptr.vmem [resolvable:$true] %s565_s9 }
  0x4a   : > { %783 = vmatprep.subr.bf16.mxu0 %v782_v41  ;;  %v486_v55 = vadd.f32 %v485_v49, %v441_v42  ;;  %v453_v23 = vmul.f32 %v350_v14, %v350_v14  ;;  %v452_v27 = vmul.f32 %v349_v24, %v349_v24  ;;  %v455_v31 = vmul.f32 %v352_v15, %v352_v15  ;;  %p919_p3 = pnand %p918_p1, %p912_p0 }
  0x4b   : > { %v465_v60 = vadd.f32 %v464_v52, %v440_v46  ;;  %v796_v33 = vpack.c.bf16 %v351_v25, %v349_v24  ;;  %v454_v34 = vmul.f32 %v351_v25, %v351_v25  ;;  %v798_v36 = vpack.c.bf16 %v356_v29, %v354_v28 }
  0x4c   : > { %v487_v1 = vadd.f32 %v486_v55, %v443_v50  ;;  %v457_v37 = vmul.f32 %v354_v28, %v354_v28  ;;  %v456_v41 = vmul.f32 %v353_v38, %v353_v38  ;;  %v459_v43 = vmul.f32 %v356_v29, %v356_v29 }
  0x4d   : > { %785 = vmatpush1.bf16.msra.mxu0 %v784_v53  ;;  %v466_v4 = vadd.f32 %v465_v60, %v442_v54  ;;  %v800_v45 = vpack.c.bf16 %v355_v39, %v353_v38  ;;  %v458_v46 = vmul.f32 %v355_v39, %v355_v39  ;;  %v520_v3 = vlaneseq }
  0x4e   : > { %787 = vmatprep.subr.bf16.mxu0 %v786_v56  ;;  %v488_v7 = vadd.f32 %v487_v1, %v445_v57 }
  0x4f   : > { %v467_v12 = vadd.f32 %v466_v4, %v444_v61  ;;  %v521_v4 = vand.u32 127, %v520_v3 }
  0x50   : > { %v489_v16 = vadd.f32 %v488_v7, %v447_v2  ;;  %v524_v7 = vstv %s1226_s13 }
  0x51   : > { %789 = vmatpush1.bf16.msra.mxu0 %v788_v5  ;;  %v468_v18 = vadd.f32 %v467_v12, %v446_v6  ;;  %v522_v6 = vadd.s32 128, %v521_v4 }
  0x52   : > { %791 = vmatprep.subr.bf16.mxu0 %v790_v8  ;;  %v490_v21 = vadd.f32 %v489_v16, %v449_v9  ;;  %v525_v8 = vadd.s32 %v524_v7, %v521_v4 }
  0x53   : > { %v469_v26 = vadd.f32 %v468_v18, %v448_v13  ;;  %v526_v11 = vadd.s32 %v524_v7, %v522_v6 }
  0x54   : > { %v491_v30 = vadd.f32 %v490_v21, %v451_v17 }
  0x55   : > { %793 = vmatpush1.bf16.msra.mxu0 %v792_v19  ;;  %v470_v32 = vadd.f32 %v469_v26, %v450_v20 }
  0x56   : > { %795 = vmatprep.subr.bf16.mxu0 %v794_v22  ;;  %v492_v35 = vadd.f32 %v491_v30, %v453_v23 }
  0x57   : > { %v471_v40 = vadd.f32 %v470_v32, %v452_v27 }
  0x58   : > { %v493_v42 = vadd.f32 %v492_v35, %v455_v31 }
  0x59   : > { %797 = vmatpush1.bf16.msra.mxu0 %v796_v33  ;;  %v472_v44 = vadd.f32 %v471_v40, %v454_v34 }
  0x5a   : > { %799 = vmatprep.subr.bf16.mxu0 %v798_v36  ;;  %v494_v47 = vadd.f32 %v493_v42, %v457_v37 }
  0x5b   : > { %v473_v48 = vadd.f32 %v472_v44, %v456_v41 }
  0x5c   : > { %v495_v49 = vadd.f32 %v494_v47, %v459_v43 }
  0x5d   : > { %801 = vmatpush1.bf16.msra.mxu0 %v800_v45  ;;  %v474_v50 = vadd.f32 %v473_v48, %v458_v46 }
  0x5e   : > { %v496_v53 = vrot.slane %v495_v49, 4 }
  0x5f   : > { %v475_v52 = vrot.slane %v474_v50, 4 }
  0x60   : > { %422 = vmatmul.mubr.f32.vlgmr.msra.gmra.mrb[0].mxu0 %v324_v51  ;;  %v497_v55 = vadd.f32 %v496_v53, %v495_v49 }
  0x61   : > { %v476_v54 = vadd.f32 %v475_v52, %v474_v50 }
  0x62   : > { %v498_v57 = vrot.slane %v497_v55, 2 }
  0x63   : > { %v477_v56 = vrot.slane %v476_v54, 2 }
  0x64   : > { %v499_v59 = vadd.f32 %v498_v57, %v497_v55 }
  0x65   : > { %v478_v58 = vadd.f32 %v477_v56, %v476_v54 }
  0x66   : > { %v500_v61 = vrot.slane %v499_v59, 1 }
  0x67   : > { %v479_v60 = vrot.slane %v478_v58, 1 }
  0x68   : > { %v501_v63 = vadd.f32 %v500_v61, %v499_v59 }
  0x69   : > { %v480_v62 = vadd.f32 %v479_v60, %v478_v58 }
  0x6a   : > { %v503_v2 = vmax.f32 %v501_v63, 1e-24 }
  0x6b   : > { %v502_v1 = vmax.f32 %v480_v62, 1e-24 }
  0x6d   : > { %875 = vrsqrt.f32 %v502_v1 }
  0x6e   : > { %877 = vrsqrt.f32 %v503_v2 }
  0x77   : > { %v876_v9 = vpop.eup %875 }
  0x78   : > { %v878_v13 = vpop.eup %877 }
  0xc3   : > { %v510_v5 = vpop.permute.xlu0 %509 }
  0xc7   : > { %v530_v12 = vpop.permute.xlu0 %529 }
  0xc8   : > { %vm531_vm0 = vcmp.eq.s32.totalorder %v525_v8, %v530_v12  ;;  %vm532_vm1 = vcmp.eq.s32.totalorder %v526_v11, %v530_v12 }
  0xc9   : > { %v533_v20 = vsel %vm531_vm0, 0.25, %v1029_v0  ;;  %v534_v22 = vsel %vm532_vm1, 0.25, %v1029_v0 }
 0x133   : > { %v423_v10 = vpop.f32.mrb[0].mxu0 }
 0x134   : > { %v512_v14 = vmul.f32 %v510_v5, %v423_v10  ;;  %v425_v15 = vpop.f32.mrb[1].mxu0 }
 0x135   : > { %v513_v16 = vmul.f32 %v510_v5, %v425_v15 }
 0x136   : > { %v514_v17 = vmul.f32 %v876_v9, %v512_v14 }
 0x137   : > { %v515_v18 = vmul.f32 %v878_v13, %v513_v16 }
 0x138   : > { %v756_v19 = vclamps-f32 %v514_v17, 0.9999999 }
 0x139   : > { %v757_v21 = vclamps-f32 %v515_v18, 0.9999999 }
 0x13a   : > { %541 = vst [vmem:[%s308_s21] sm:$0xff] %v756_v19  ;;  %v535_v23 = vsub.f32 %v756_v19, %v533_v20 }
 0x13b   : > { %v536_v24 = vsub.f32 %v757_v21, %v534_v22  ;;  %542 = vst [vmem:[%s308_s21 + $0x8] sm:$0xff] %v757_v21 }
 0x13c   : > { %v537_v25 = vmul.f32 30.0, %v535_v23 }
 0x13d   : > { %922 = shalt.err (!%p919_p3)
}
 0x13e   : > { %s923_s13 = scalar_lea.hbm %s1234_s10, 256  ;;  %s927_s30 = scalar_lea.hbm %s1327_s5, 512 }
 0x13f   : > { %p924_p4 = scmp.ne.s32.totalorder %s1234_s10, %s923_s13  ;;  %p928_p12 = scmp.lt.u32.totalorder %s1234_s10, %s1327_s5 }
 0x140   : > { %p929_p2 = scmp.lt.u32.totalorder %s927_s30, %s923_s13  ;;  %p931_p8 = scmp.lt.u32.totalorder %s923_s13, %s1234_s10 }
 0x141   : > { %p925_p6 = pnand %p924_p4, %p1334_p9 }
 0x142   : > { %p930_p5 = por %p929_p2, %p928_p12 }
 0x143   : > { %p926_p7 = pneg %p925_p6 }
 0x144   : > { %p932_p11 = por %p931_p8, %p930_p5 }
 0x146   : > { %p933_p0 = pnand %p932_p11, %p926_p7 }
 0x148   : > { %936 = shalt.err (!%p933_p0)
}
 0x149   : > { %805 = dma.vmem_to_hbm [thread:$0]  (%p1334_p9), %s1237_s25, 256, %s1234_s10, %s549_s17   ;;  %v538_v0 = vmul.f32 30.0, %v536_v24  ;;  %539 = vst [vmem:[%s1240_s11] sm:$0xff] %v537_v25 }
 0x14a   : > { %s544_s24 = scalar_lea.sflag [#allocation4], %s1173_s28  ;;  %s937_s27 = scalar_lea.vmem %s1273_s9, 256 }
 0x14b   : > { %540 = vst [vmem:[%s1240_s11 + $0x8] sm:$0xff] %v538_v0  ;;  %p938_p10 = scmp.ne.s32.totalorder %s1273_s9, %s937_s27  ;;  %s1032_s15 = smov [#allocation5]  }
 0x14c   : > { %s941_s13 = sshll.u32 %s1032_s15, 4  ;;  %s942_s13 = int_to_ptr.vmem [resolvable:$false] %s941_s13 }
 0x14d   : > { %p939_p13 = pnand %p938_p10, %p1334_p9  ;;  %s943_s21 = scalar_lea.vmem %s942_s13, 512 }
 0x14e   : > { %p944_p3 = scmp.lt.s32.totalorder %s1273_s9, %s942_s13  ;;  %p945_p4 = scmp.lt.s32.totalorder %s943_s21, %s937_s27 }
 0x14f   : > { %p940_p1 = pneg %p939_p13 }
 0x150   : > { %p946_p6 = por %p945_p4, %p944_p3 }
 0x152   : > { %p947_p7 = pnand %p946_p6, %p940_p1 }
 0x154   : > { %950 = shalt.err (!%p947_p7)
}
 0x155   : > { %s951_s28 = scalar_lea.hbm %s1247_s16, 256  ;;  %s955_s11 = scalar_lea.hbm %s1326_s4, 512 }
 0x156   : > { %p952_p12 = scmp.ne.s32.totalorder %s1247_s16, %s951_s28  ;;  %p956_p8 = scmp.lt.u32.totalorder %s1247_s16, %s1326_s4 }
 0x157   : > { %p957_p11 = scmp.lt.u32.totalorder %s955_s11, %s951_s28  ;;  %p959_p10 = scmp.lt.u32.totalorder %s951_s28, %s1247_s16 }
 0x158   : > { %p953_p2 = pnand %p952_p12, %p1334_p9 }
 0x159   : > { %p958_p0 = por %p957_p11, %p956_p8 }
 0x15a   : > { %p954_p5 = pneg %p953_p2 }
 0x15b   : > { %p960_p13 = por %p959_p10, %p958_p0 }
 0x15d   : > { %p961_p1 = pnand %p960_p13, %p954_p5 }
 0x15f   : > { %964 = shalt.err (!%p961_p1)
}
 0x160   : > { %804 = dma.vmem_to_hbm [thread:$0]  (%p1334_p9), %s1273_s9, 256, %s1247_s16, %s544_s24  }
 0x161 PF: > { %s593_s30 = sand.u32 1, %s1003_s18   ;;  %p1335_p3 = scmp.ne.s32.totalorder %s1332_s8, 0 }
 0x162   : > { %p1336_p4 = scmp.ge.s32.totalorder %s1023_s23, 2  ;;  %s594_s14 = scalar_lea.sflag [#allocation4], %s593_s30 }
 0x164   : > { %p813_p6 = pnand %p1336_p4, %p1335_p3 }
 0x166   : > { %994 = dma.done.wait (!%p813_p6), %s594_s14, 256  }
 0x167   : > { %996 = vsyncadd (!%p813_p6), %s594_s14, 4294967040  ;;  %s603_s12 = scalar_lea.sflag [#allocation7], %s593_s30 }
 0x168   : > { %998 = dma.done.wait (!%p813_p6), %s603_s12, 256  }
 0x169   : > { %1000 = vsyncadd (!%p813_p6), %s603_s12, 4294967040  ;;  %s25_s23 = sadd.s32 1, %s1023_s23   ;;  %s1337_s18 = smov %s1007_s19 }
 0x16a   : > { %p22_p7 = scmp.ge.s32.totalorder %s25_s23, 4   ;;  %s1338_s19 = smov %s1011_s20 }
 0x16b   : > { %s1339_s20 = smov %s1119_s7  ;;  %s1340_s21 = smov %s1019_s22 }
 0x16c   : > { %s1341_s22 = smov %s1343_s26  ;;  %24 = sbr.rel (!%p22_p7) target bundleno = 8 (0x8), region = 107 }
 0x173   :  { %608 = vsyncpa [#allocation3], 1 }
 0x174   :  { %610 = vsyncpa [#allocation3 + $0x1], 1 }
 0x175   :  { %611 = vsyncpa [#allocation4], 1 }
 0x176   :  { %613 = vsyncpa [#allocation4 + $0x1], 1 }
 0x177   :  { %614 = vsyncpa [#allocation7], 1 }
 0x178   :  { %616 = vsyncpa [#allocation7 + $0x1], 1 }

</bundles_post_ra>
